<compile_context>
chip_gen: v6e
topology: v6e:2x2x1
jax: 0.10.0
libtpu: 0.0.40
codegen_flags: <defaults>
</compile_context>

<pallas_src>
import functools

import jax
import jax.numpy as jnp
from jax.experimental import pallas as pl
from jax.experimental.pallas import tpu as pltpu

_MAX_TILE = 2048          # bf16 adj tile 8 MiB, double-buffered 16 MiB
_LANE = 128               # lane-dense padded feature width for F_in / H / F_out
_VMEM_LIMIT = 48 * 1024 * 1024  # covers the 2048 tile on v5e's small default limit


# --------------------------------------------------------------------------- #
# Kernels
# --------------------------------------------------------------------------- #
def _conv1_kernel(tile, adj_ref, x_ref, w1_ref, b12_ref, w2_ref, w5_ref,
                  z_ref, acc_ref):
    """agg = A_hat @ x (accumulated over src blocks), then conv1 MLP fused with h @ w5."""
    k = pl.program_id(1)

    @pl.when(k == 0)
    def _():
        acc_ref[...] = jnp.zeros_like(acc_ref)

    # x is VMEM-resident; slice the current src block in-kernel (no per-step DMA).
    off = pl.multiple_of(k * tile, tile)
    x_blk = x_ref[pl.ds(off, tile), :]                       # bf16 [tile, 128]
    acc_ref[...] += jnp.dot(adj_ref[...], x_blk,
                            preferred_element_type=jnp.float32)

    @pl.when(k == pl.num_programs(1) - 1)
    def _():
        agg = acc_ref[...].astype(jnp.bfloat16)              # [tile, 128]
        b12 = b12_ref[...]                                   # [2, 128] f32
        h = jnp.dot(agg, w1_ref[...],
                    preferred_element_type=jnp.float32) + b12[0:1, :]
        h = jnp.maximum(h, 0.0).astype(jnp.bfloat16)
        h = jnp.dot(h, w2_ref[...],
                    preferred_element_type=jnp.float32) + b12[1:2, :]
        h = jnp.maximum(h, 0.0).astype(jnp.bfloat16)
        # TODO(synk): dropout(p=0.5) between conv1 and conv5 is eval-mode identity;
        # training-mode masking would use pltpu.prng_seed + pltpu.prng_random_bits here.
        z = jnp.dot(h, w5_ref[...], preferred_element_type=jnp.float32)
        z_ref[...] = z.astype(jnp.bfloat16)                  # single bf16 cast


def _conv5_kernel(tile, adj_ref, z_ref, b5_ref, out_ref, acc_ref):
    """logits = A_hat @ z + b5 (accumulated over src blocks), then log_softmax."""
    k = pl.program_id(1)

    @pl.when(k == 0)
    def _():
        acc_ref[...] = jnp.zeros_like(acc_ref)

    off = pl.multiple_of(k * tile, tile)
    z_blk = z_ref[pl.ds(off, tile), :]                       # bf16 [tile, 128]
    acc_ref[...] += jnp.dot(adj_ref[...], z_blk,
                            preferred_element_type=jnp.float32)

    @pl.when(k == pl.num_programs(1) - 1)
    def _():
        # Padded feature columns of b5 are -1e9 -> they vanish under softmax.
        logits = acc_ref[...] + b5_ref[...]
        m = jnp.max(logits, axis=-1, keepdims=True)
        s = logits - m
        lse = jnp.log(jnp.sum(jnp.exp(s), axis=-1, keepdims=True))
        out_ref[...] = s - lse


# --------------------------------------------------------------------------- #
# Wrapper
# --------------------------------------------------------------------------- #
def _padded_size(n):
    """Pad N so the (row, src) grid divides evenly; full extent when small."""
    if n >= _MAX_TILE:
        return ((n + _MAX_TILE - 1) // _MAX_TILE) * _MAX_TILE
    # Small graphs: a single full-extent block (round to 16 for bf16 sublanes).
    return ((n + 15) // 16) * 16
    # NOTE(v7x): for very large graphs one could additionally make the row-block
    # count even so both TensorCores get balanced work; skipped here because the
    # extra N^2 padding usually costs more than the idle tail block.


def _pad2(a, rows, cols, fill=0.0):
    return jnp.pad(a, ((0, rows - a.shape[0]), (0, cols - a.shape[1])),
                   constant_values=fill)


@jax.jit
def gin_net_forward(adj_hat, x, w1, b1, w2, b2, w5, b5):
    """adj_hat: [n_pad, n_pad] bf16 dense adjacency with (1+eps)*I already folded in
    (padded rows/cols are zero).  x: [n, F_in] node features.  Returns [n, F_out]."""
    n_pad = adj_hat.shape[0]
    n, f_in = x.shape
    hidden = w1.shape[1]
    f_out = w5.shape[1]
    F = _LANE

    tile = _MAX_TILE if n_pad >= _MAX_TILE else n_pad
    kb = n_pad // tile
    grid = (kb, kb)

    # Lane-dense, bf16 operands (all tiny compared to the N^2 adjacency stream).
    x_p = _pad2(x, n_pad, F).astype(jnp.bfloat16)
    w1p = _pad2(w1, F, F).astype(jnp.bfloat16)
    w2p = _pad2(w2, F, F).astype(jnp.bfloat16)
    w5p = _pad2(w5, F, F).astype(jnp.bfloat16)
    b12 = jnp.concatenate([_pad2(b1, 1, F), _pad2(b2, 1, F)], axis=0)   # [2,128] f32
    b5p = _pad2(b5, 1, F, fill=-1e9)                                    # [1,128] f32
    # TODO(synk): per-generation A_hat dtype (int8 on v5e/v6e, fp8 e4m3 on v7x)
    # would halve the dominant HBM stream again; bf16 kept for portability.
    # TODO(synk): for sparse graphs, skip all-zero A_hat tiles via
    # pltpu.PrefetchScalarGridSpec with a data-dependent index_map.

    cparams = pltpu.CompilerParams(
        dimension_semantics=("parallel", "arbitrary"),   # rows across cores (v7x)
        vmem_limit_bytes=_VMEM_LIMIT)

    # ---- kernel 1: conv1 (aggregate + MLP), fused with z = h @ w5 ----
    cost1 = pl.CostEstimate(
        flops=int(2 * n_pad * n_pad * F + 3 * 2 * n_pad * F * F),
        transcendentals=0,
        bytes_accessed=int(2 * n_pad * n_pad          # A_hat (bf16)
                           + 2 * n_pad * F            # resident x (bf16, read once)
                           + 3 * 2 * F * F            # w1/w2/w5 (bf16)
                           + 4 * 2 * F                # b12
                           + 2 * n_pad * F))          # z out (bf16)
    z = pl.pallas_call(
        functools.partial(_conv1_kernel, tile),
        out_shape=jax.ShapeDtypeStruct((n_pad, F), jnp.bfloat16),
        grid=grid,
        in_specs=[
            pl.BlockSpec((tile, tile), lambda i, k: (i, k)),    # A_hat tile
            pl.BlockSpec((n_pad, F), lambda i, k: (0, 0)),      # x (VMEM resident)
            pl.BlockSpec((F, F), lambda i, k: (0, 0)),          # w1
            pl.BlockSpec((2, F), lambda i, k: (0, 0)),          # [b1; b2]
            pl.BlockSpec((F, F), lambda i, k: (0, 0)),          # w2
            pl.BlockSpec((F, F), lambda i, k: (0, 0)),          # w5
        ],
        out_specs=pl.BlockSpec((tile, F), lambda i, k: (i, 0)),
        scratch_shapes=[pltpu.VMEM((tile, F), jnp.float32)],
        compiler_params=cparams,
        cost_estimate=cost1,
    )(adj_hat, x_p, w1p, b12, w2p, w5p)

    # ---- kernel 2: logits = A_hat @ z + b5, then log_softmax ----
    cost2 = pl.CostEstimate(
        flops=int(2 * n_pad * n_pad * F + 6 * n_pad * F),
        transcendentals=int(n_pad * (F + 1)),
        bytes_accessed=int(2 * n_pad * n_pad          # A_hat (bf16)
                           + 2 * n_pad * F            # resident z (bf16, read once)
                           + 4 * F                    # b5
                           + 4 * n_pad * F))          # output (f32)
    out = pl.pallas_call(
        functools.partial(_conv5_kernel, tile),
        out_shape=jax.ShapeDtypeStruct((n_pad, F), jnp.float32),
        grid=grid,
        in_specs=[
            pl.BlockSpec((tile, tile), lambda i, k: (i, k)),    # A_hat tile
            pl.BlockSpec((n_pad, F), lambda i, k: (0, 0)),      # z (VMEM resident)
            pl.BlockSpec((1, F), lambda i, k: (0, 0)),          # b5
        ],
        out_specs=pl.BlockSpec((tile, F), lambda i, k: (i, 0)),
        scratch_shapes=[pltpu.VMEM((tile, F), jnp.float32)],
        compiler_params=cparams,
        cost_estimate=cost2,
    )(adj_hat, z, b5p)

    return out[:n, :f_out]


# --------------------------------------------------------------------------- #
# Host-side helpers / reference
# --------------------------------------------------------------------------- #
def build_padded_adj_hat(edge_index, num_nodes, dtype=jnp.bfloat16, eps=0.0):
    """A_hat[dst, src] = edge multiplicity + (1+eps) on the (first num_nodes) diagonal,
    built directly in the padded shape and storage dtype (single materialization).
    TODO(synk): if train_eps / eps != 0 per conv, carry a per-conv diagonal instead."""
    n_pad = _padded_size(num_nodes)
    src, dst = edge_index
    adj = jnp.zeros((n_pad, n_pad), dtype)
    adj = adj.at[dst, src].add(jnp.ones(src.shape, dtype))
    diag = jnp.arange(num_nodes)
    adj = adj.at[diag, diag].add(jnp.full((num_nodes,), 1.0 + eps, dtype))
    return adj


def _linear_params(key, fan_in, fan_out):
    # Deterministic init mimicking torch.nn.Linear (uniform +/- 1/sqrt(fan_in)).
    kw, kb = jax.random.split(key)
    bound = 1.0 / jnp.sqrt(jnp.float32(fan_in))
    w = jax.random.uniform(kw, (fan_in, fan_out), jnp.float32, -bound, bound)
    b = jax.random.uniform(kb, (1, fan_out), jnp.float32, -bound, bound)
    return w, b


def _reference_forward(edge_index, num_nodes, x, w1, b1, w2, b2, w5, b5):
    src, dst = edge_index
    adj = jnp.zeros((num_nodes, num_nodes), jnp.float32).at[dst, src].add(1.0)
    a_hat = adj + jnp.eye(num_nodes, dtype=jnp.float32)
    h = jnp.maximum((a_hat @ x) @ w1 + b1, 0.0)
    h = jnp.maximum(h @ w2 + b2, 0.0)
    logits = (a_hat @ h) @ w5 + b5
    return jax.nn.log_softmax(logits, axis=-1)


if __name__ == "__main__":
    # Small shapes consistent with the module: N nodes, input_fea, hidden, output_fea.
    N, INPUT_FEA, HIDDEN, OUTPUT_FEA = 16, 8, 32, 8

    key = jax.random.PRNGKey(0)
    k_x, k1, k2, k5 = jax.random.split(key, 4)

    # Node features.
    x = jax.random.normal(k_x, (N, INPUT_FEA), jnp.float32)

    # Deterministic edge_index: bidirectional ring graph over N nodes.
    src = jnp.arange(N, dtype=jnp.int32)
    dst = (src + 1) % N
    edge_index = jnp.stack(
        [jnp.concatenate([src, dst]), jnp.concatenate([dst, src])], axis=0
    )
    adj_hat = build_padded_adj_hat(edge_index, N)

    # Parameters (only conv1 and conv5 are used in forward()).
    w1, b1 = _linear_params(k1, INPUT_FEA, HIDDEN)   # conv1.nn[0]
    w2, b2 = _linear_params(k2, HIDDEN, HIDDEN)      # conv1.nn[2]
    w5, b5 = _linear_params(k5, HIDDEN, OUTPUT_FEA)  # conv5.nn[0]

    out = gin_net_forward(adj_hat, x, w1, b1, w2, b2, w5, b5)
    out = jax.block_until_ready(out)

    assert out.shape == (N, OUTPUT_FEA)
    # log_softmax rows must (approximately) sum to 1 in prob space.
    assert jnp.allclose(jnp.sum(jnp.exp(out), axis=-1), 1.0, atol=1e-4)
    # Pure-JAX f32 reference; tolerance accounts for the bf16 adjacency/MLP path.
    ref = _reference_forward(edge_index, N, x, w1, b1, w2, b2, w5, b5)
    assert float(jnp.max(jnp.abs(out - ref))) < 1e-1

    print("KERNEL_OK")
</pallas_src>

<mosaic_0001>
module attributes {stable_mosaic.version = 11 : i64} {
  func.func @_conv5_kernel(%arg0: i32, %arg1: i32, %arg2: memref<16x16xbf16, #tpu.memory_space<vmem>>, %arg3: memref<16x128xbf16, #tpu.memory_space<vmem>>, %arg4: memref<1x128xf32, #tpu.memory_space<vmem>>, %arg5: memref<16x128xf32, #tpu.memory_space<vmem>>, %arg6: memref<16x128xf32, #tpu.memory_space<vmem>>) attributes {dimension_semantics = [#tpu.dimension_semantics<parallel>, #tpu.dimension_semantics<arbitrary>], iteration_bounds = array<i64: 1, 1>, scalar_prefetch = 0 : i64, scratch_operands = 1 : i64, tpu.core_type = #tpu.core_type<tc>, window_params = [{transform_indices = @transform_0, window_bounds = array<i64: 16, 16>}, {pipeline_mode = #tpu.pipeline_mode<synchronous>, transform_indices = @transform_1, window_bounds = array<i64: 16, 128>}, {pipeline_mode = #tpu.pipeline_mode<synchronous>, transform_indices = @transform_2, window_bounds = array<i64: 1, 128>}, {transform_indices = @transform_3, window_bounds = array<i64: 16, 128>}]} {
    %c0_i32 = arith.constant 0 : i32
    %0 = arith.cmpi eq, %arg1, %c0_i32 : i32
    %1 = arith.extui %0 : i1 to i32
    %c0_i32_0 = arith.constant 0 : i32
    %2 = arith.cmpi ne, %1, %c0_i32_0 : i32
    scf.if %2 {
      %cst_9 = arith.constant 0.000000e+00 : f32
      %15 = vector.broadcast %cst_9 : f32 to vector<16x128xf32>
      %c0_10 = arith.constant 0 : index
      %c0_11 = arith.constant 0 : index
      %16 = vector.load %arg6[%c0_10, %c0_11] : memref<16x128xf32, #tpu.memory_space<vmem>>, vector<16x128xf32>
      tpu.vector_store %arg6[%c0_10, %c0_11], %15 {strides = array<i32>} : memref<16x128xf32, #tpu.memory_space<vmem>>, vector<16x128xf32>,
    } else {
    }
    %c16_i32 = arith.constant 16 : i32
    %3 = arith.muli %arg1, %c16_i32 : i32
    %4 = tpu.assume_multiple %3, 16 : i32
    %5 = arith.index_cast %4 : i32 to index
    %c0 = arith.constant 0 : index
    %6 = vector.load %arg3[%5, %c0] : memref<16x128xbf16, #tpu.memory_space<vmem>>, vector<16x128xbf16>
    %c0_1 = arith.constant 0 : index
    %c0_2 = arith.constant 0 : index
    %7 = vector.load %arg6[%c0_1, %c0_2] : memref<16x128xf32, #tpu.memory_space<vmem>>, vector<16x128xf32>
    %c0_3 = arith.constant 0 : index
    %c0_4 = arith.constant 0 : index
    %8 = vector.load %arg2[%c0_3, %c0_4] : memref<16x16xbf16, #tpu.memory_space<vmem>>, vector<16x16xbf16>
    %cst = arith.constant dense<0.000000e+00> : vector<16x128xf32>
    %9 = tpu.matmul %8, %6, %cst {dimension_numbers = #tpu.dot_dimension_numbers<[1], [0], [0], [1], [0, 0, 1, 1], [], []>} : vector<16x16xbf16>, vector<16x128xbf16>, vector<16x128xf32> -> vector<16x128xf32>
    %10 = arith.addf %7, %9 : vector<16x128xf32>
    %c0_5 = arith.constant 0 : index
    %c0_6 = arith.constant 0 : index
    %11 = vector.load %arg6[%c0_5, %c0_6] : memref<16x128xf32, #tpu.memory_space<vmem>>, vector<16x128xf32>
    tpu.vector_store %arg6[%c0_5, %c0_6], %10 {strides = array<i32>} : memref<16x128xf32, #tpu.memory_space<vmem>>, vector<16x128xf32>,
    %c0_i32_7 = arith.constant 0 : i32
    %12 = arith.cmpi eq, %arg1, %c0_i32_7 : i32
    %13 = arith.extui %12 : i1 to i32
    %c0_i32_8 = arith.constant 0 : i32
    %14 = arith.cmpi ne, %13, %c0_i32_8 : i32
    scf.if %14 {
      %c0_9 = arith.constant 0 : index
      %c0_10 = arith.constant 0 : index
      %15 = vector.load %arg6[%c0_9, %c0_10] : memref<16x128xf32, #tpu.memory_space<vmem>>, vector<16x128xf32>
      %c0_11 = arith.constant 0 : index
      %c0_12 = arith.constant 0 : index
      %16 = vector.load %arg4[%c0_11, %c0_12] : memref<1x128xf32, #tpu.memory_space<vmem>>, vector<1x128xf32>
      %17 = vector.broadcast %16 : vector<1x128xf32> to vector<16x128xf32>
      %18 = arith.addf %15, %17 : vector<16x128xf32>
      %cst_13 = arith.constant dense<0xFF800000> : vector<16xf32>
      %19 = vector.multi_reduction <maximumf>, %18, %cst_13 [1] : vector<16x128xf32> to vector<16xf32>
      %20 = vector.shape_cast %19 : vector<16xf32> to vector<16x1xf32>
      %21 = vector.broadcast %20 : vector<16x1xf32> to vector<16x128xf32>
      %22 = arith.subf %18, %21 : vector<16x128xf32>
      %23 = math.exp %22 : vector<16x128xf32>
      %cst_14 = arith.constant dense<0.000000e+00> : vector<16xf32>
      %24 = vector.multi_reduction <add>, %23, %cst_14 [1] : vector<16x128xf32> to vector<16xf32>
      %25 = vector.shape_cast %24 : vector<16xf32> to vector<16x1xf32>
      %26 = math.log %25 : vector<16x1xf32>
      %27 = vector.broadcast %26 : vector<16x1xf32> to vector<16x128xf32>
      %28 = arith.subf %22, %27 : vector<16x128xf32>
      %c0_15 = arith.constant 0 : index
      %c0_16 = arith.constant 0 : index
      %29 = vector.load %arg5[%c0_15, %c0_16] : memref<16x128xf32, #tpu.memory_space<vmem>>, vector<16x128xf32>
      tpu.vector_store %arg5[%c0_15, %c0_16], %28 {strides = array<i32>} : memref<16x128xf32, #tpu.memory_space<vmem>>, vector<16x128xf32>,
    } else {
    }
    return
  }
  func.func @transform_0(%arg0: i32, %arg1: i32) -> (i32, i32) {
    %c0_i32 = arith.constant 0 : i32
    return %arg0, %arg1 : i32, i32
  }
  func.func @transform_1(%arg0: i32, %arg1: i32) -> (i32, i32) {
    %c0_i32 = arith.constant 0 : i32
    %c0_i32_0 = arith.constant 0 : i32
    %c0_i32_1 = arith.constant 0 : i32
    return %c0_i32, %c0_i32_0 : i32, i32
  }
  func.func @transform_2(%arg0: i32, %arg1: i32) -> (i32, i32) {
    %c0_i32 = arith.constant 0 : i32
    %c0_i32_0 = arith.constant 0 : i32
    %c0_i32_1 = arith.constant 0 : i32
    return %c0_i32, %c0_i32_0 : i32, i32
  }
  func.func @transform_3(%arg0: i32, %arg1: i32) -> (i32, i32) {
    %c0_i32 = arith.constant 0 : i32
    %c0_i32_0 = arith.constant 0 : i32
    return %arg0, %c0_i32 : i32, i32
  }
}

module attributes {stable_mosaic.version = 11 : i64} {
  func.func @_conv1_kernel(%arg0: i32, %arg1: i32, %arg2: memref<16x16xbf16, #tpu.memory_space<vmem>>, %arg3: memref<16x128xbf16, #tpu.memory_space<vmem>>, %arg4: memref<128x128xbf16, #tpu.memory_space<vmem>>, %arg5: memref<2x128xf32, #tpu.memory_space<vmem>>, %arg6: memref<128x128xbf16, #tpu.memory_space<vmem>>, %arg7: memref<128x128xbf16, #tpu.memory_space<vmem>>, %arg8: memref<16x128xbf16, #tpu.memory_space<vmem>>, %arg9: memref<16x128xf32, #tpu.memory_space<vmem>>) attributes {dimension_semantics = [#tpu.dimension_semantics<parallel>, #tpu.dimension_semantics<arbitrary>], iteration_bounds = array<i64: 1, 1>, scalar_prefetch = 0 : i64, scratch_operands = 1 : i64, tpu.core_type = #tpu.core_type<tc>, window_params = [{transform_indices = @transform_0, window_bounds = array<i64: 16, 16>}, {pipeline_mode = #tpu.pipeline_mode<synchronous>, transform_indices = @transform_1, window_bounds = array<i64: 16, 128>}, {pipeline_mode = #tpu.pipeline_mode<synchronous>, transform_indices = @transform_2, window_bounds = array<i64: 128, 128>}, {pipeline_mode = #tpu.pipeline_mode<synchronous>, transform_indices = @transform_3, window_bounds = array<i64: 2, 128>}, {pipeline_mode = #tpu.pipeline_mode<synchronous>, transform_indices = @transform_4, window_bounds = array<i64: 128, 128>}, {pipeline_mode = #tpu.pipeline_mode<synchronous>, transform_indices = @transform_5, window_bounds = array<i64: 128, 128>}, {transform_indices = @transform_6, window_bounds = array<i64: 16, 128>}]} {
    %c0_i32 = arith.constant 0 : i32
    %0 = arith.cmpi eq, %arg1, %c0_i32 : i32
    %1 = arith.extui %0 : i1 to i32
    %c0_i32_0 = arith.constant 0 : i32
    %2 = arith.cmpi ne, %1, %c0_i32_0 : i32
    scf.if %2 {
      %cst_9 = arith.constant 0.000000e+00 : f32
      %15 = vector.broadcast %cst_9 : f32 to vector<16x128xf32>
      %c0_10 = arith.constant 0 : index
      %c0_11 = arith.constant 0 : index
      %16 = vector.load %arg9[%c0_10, %c0_11] : memref<16x128xf32, #tpu.memory_space<vmem>>, vector<16x128xf32>
      tpu.vector_store %arg9[%c0_10, %c0_11], %15 {strides = array<i32>} : memref<16x128xf32, #tpu.memory_space<vmem>>, vector<16x128xf32>,
    } else {
    }
    %c16_i32 = arith.constant 16 : i32
    %3 = arith.muli %arg1, %c16_i32 : i32
    %4 = tpu.assume_multiple %3, 16 : i32
    %5 = arith.index_cast %4 : i32 to index
    %c0 = arith.constant 0 : index
    %6 = vector.load %arg3[%5, %c0] : memref<16x128xbf16, #tpu.memory_space<vmem>>, vector<16x128xbf16>
    %c0_1 = arith.constant 0 : index
    %c0_2 = arith.constant 0 : index
    %7 = vector.load %arg9[%c0_1, %c0_2] : memref<16x128xf32, #tpu.memory_space<vmem>>, vector<16x128xf32>
    %c0_3 = arith.constant 0 : index
    %c0_4 = arith.constant 0 : index
    %8 = vector.load %arg2[%c0_3, %c0_4] : memref<16x16xbf16, #tpu.memory_space<vmem>>, vector<16x16xbf16>
    %cst = arith.constant dense<0.000000e+00> : vector<16x128xf32>
    %9 = tpu.matmul %8, %6, %cst {dimension_numbers = #tpu.dot_dimension_numbers<[1], [0], [0], [1], [0, 0, 1, 1], [], []>} : vector<16x16xbf16>, vector<16x128xbf16>, vector<16x128xf32> -> vector<16x128xf32>
    %10 = arith.addf %7, %9 : vector<16x128xf32>
    %c0_5 = arith.constant 0 : index
    %c0_6 = arith.constant 0 : index
    %11 = vector.load %arg9[%c0_5, %c0_6] : memref<16x128xf32, #tpu.memory_space<vmem>>, vector<16x128xf32>
    tpu.vector_store %arg9[%c0_5, %c0_6], %10 {strides = array<i32>} : memref<16x128xf32, #tpu.memory_space<vmem>>, vector<16x128xf32>,
    %c0_i32_7 = arith.constant 0 : i32
    %12 = arith.cmpi eq, %arg1, %c0_i32_7 : i32
    %13 = arith.extui %12 : i1 to i32
    %c0_i32_8 = arith.constant 0 : i32
    %14 = arith.cmpi ne, %13, %c0_i32_8 : i32
    scf.if %14 {
      %c0_9 = arith.constant 0 : index
      %c0_10 = arith.constant 0 : index
      %15 = vector.load %arg9[%c0_9, %c0_10] : memref<16x128xf32, #tpu.memory_space<vmem>>, vector<16x128xf32>
      %16 = arith.truncf %15 : vector<16x128xf32> to vector<16x128xbf16>
      %c0_11 = arith.constant 0 : index
      %c0_12 = arith.constant 0 : index
      %17 = vector.load %arg5[%c0_11, %c0_12] : memref<2x128xf32, #tpu.memory_space<vmem>>, vector<2x128xf32>
      %c0_13 = arith.constant 0 : index
      %c0_14 = arith.constant 0 : index
      %18 = vector.load %arg4[%c0_13, %c0_14] : memref<128x128xbf16, #tpu.memory_space<vmem>>, vector<128x128xbf16>
      %cst_15 = arith.constant dense<0.000000e+00> : vector<16x128xf32>
      %19 = tpu.matmul %16, %18, %cst_15 {dimension_numbers = #tpu.dot_dimension_numbers<[1], [0], [0], [1], [0, 0, 1, 1], [], []>} : vector<16x128xbf16>, vector<128x128xbf16>, vector<16x128xf32> -> vector<16x128xf32>
      %20 = vector.extract_strided_slice %17 {offsets = [0, 0], sizes = [1, 128], strides = [1, 1]} : vector<2x128xf32> to vector<1x128xf32>
      %21 = vector.broadcast %20 : vector<1x128xf32> to vector<16x128xf32>
      %22 = arith.addf %19, %21 : vector<16x128xf32>
      %cst_16 = arith.constant 0.000000e+00 : f32
      %23 = vector.broadcast %cst_16 : f32 to vector<16x128xf32>
      %24 = arith.maximumf %22, %23 : vector<16x128xf32>
      %25 = arith.truncf %24 : vector<16x128xf32> to vector<16x128xbf16>
      %c0_17 = arith.constant 0 : index
      %c0_18 = arith.constant 0 : index
      %26 = vector.load %arg6[%c0_17, %c0_18] : memref<128x128xbf16, #tpu.memory_space<vmem>>, vector<128x128xbf16>
      %cst_19 = arith.constant dense<0.000000e+00> : vector<16x128xf32>
      %27 = tpu.matmul %25, %26, %cst_19 {dimension_numbers = #tpu.dot_dimension_numbers<[1], [0], [0], [1], [0, 0, 1, 1], [], []>} : vector<16x128xbf16>, vector<128x128xbf16>, vector<16x128xf32> -> vector<16x128xf32>
      %28 = vector.extract_strided_slice %17 {offsets = [1, 0], sizes = [1, 128], strides = [1, 1]} : vector<2x128xf32> to vector<1x128xf32>
      %29 = vector.broadcast %28 : vector<1x128xf32> to vector<16x128xf32>
      %30 = arith.addf %27, %29 : vector<16x128xf32>
      %cst_20 = arith.constant 0.000000e+00 : f32
      %31 = vector.broadcast %cst_20 : f32 to vector<16x128xf32>
      %32 = arith.maximumf %30, %31 : vector<16x128xf32>
      %33 = arith.truncf %32 : vector<16x128xf32> to vector<16x128xbf16>
      %c0_21 = arith.constant 0 : index
      %c0_22 = arith.constant 0 : index
      %34 = vector.load %arg7[%c0_21, %c0_22] : memref<128x128xbf16, #tpu.memory_space<vmem>>, vector<128x128xbf16>
      %cst_23 = arith.constant dense<0.000000e+00> : vector<16x128xf32>
      %35 = tpu.matmul %33, %34, %cst_23 {dimension_numbers = #tpu.dot_dimension_numbers<[1], [0], [0], [1], [0, 0, 1, 1], [], []>} : vector<16x128xbf16>, vector<128x128xbf16>, vector<16x128xf32> -> vector<16x128xf32>
      %36 = arith.truncf %35 : vector<16x128xf32> to vector<16x128xbf16>
      %c0_24 = arith.constant 0 : index
      %c0_25 = arith.constant 0 : index
      %37 = vector.load %arg8[%c0_24, %c0_25] : memref<16x128xbf16, #tpu.memory_space<vmem>>, vector<16x128xbf16>
      tpu.vector_store %arg8[%c0_24, %c0_25], %36 {strides = array<i32>} : memref<16x128xbf16, #tpu.memory_space<vmem>>, vector<16x128xbf16>,
    } else {
    }
    return
  }
  func.func @transform_0(%arg0: i32, %arg1: i32) -> (i32, i32) {
    %c0_i32 = arith.constant 0 : i32
    return %arg0, %arg1 : i32, i32
  }
  func.func @transform_1(%arg0: i32, %arg1: i32) -> (i32, i32) {
    %c0_i32 = arith.constant 0 : i32
    %c0_i32_0 = arith.constant 0 : i32
    %c0_i32_1 = arith.constant 0 : i32
    return %c0_i32, %c0_i32_0 : i32, i32
  }
  func.func @transform_2(%arg0: i32, %arg1: i32) -> (i32, i32) {
    %c0_i32 = arith.constant 0 : i32
    %c0_i32_0 = arith.constant 0 : i32
    %c0_i32_1 = arith.constant 0 : i32
    return %c0_i32, %c0_i32_0 : i32, i32
  }
  func.func @transform_3(%arg0: i32, %arg1: i32) -> (i32, i32) {
    %c0_i32 = arith.constant 0 : i32
    %c0_i32_0 = arith.constant 0 : i32
    %c0_i32_1 = arith.constant 0 : i32
    return %c0_i32, %c0_i32_0 : i32, i32
  }
  func.func @transform_4(%arg0: i32, %arg1: i32) -> (i32, i32) {
    %c0_i32 = arith.constant 0 : i32
    %c0_i32_0 = arith.constant 0 : i32
    %c0_i32_1 = arith.constant 0 : i32
    return %c0_i32, %c0_i32_0 : i32, i32
  }
  func.func @transform_5(%arg0: i32, %arg1: i32) -> (i32, i32) {
    %c0_i32 = arith.constant 0 : i32
    %c0_i32_0 = arith.constant 0 : i32
    %c0_i32_1 = arith.constant 0 : i32
    return %c0_i32, %c0_i32_0 : i32, i32
  }
  func.func @transform_6(%arg0: i32, %arg1: i32) -> (i32, i32) {
    %c0_i32 = arith.constant 0 : i32
    %c0_i32_0 = arith.constant 0 : i32
    return %arg0, %c0_i32 : i32, i32
  }
}

</mosaic_0001>

<bundles_post_ra>
// kernel: gin_net_forward.3
= control target key start
LH: loop header
LB: loop body
LE: loop exit
PB: predicated region body
PF: predicated region fallthrough
CT: control target
= control target key end

     0   :  { %v158_v0 = vmov 0.0   ;;  %vm159_vm0 = vmmov 0   ;;  %vm43_vm1 = vcmask 130048   ;;  %s195_s1 = inlined_call_operand.vmem [shape: bf16[16,128], index: 1, kind: input, shape index: {}]   ;;  %s196_s0 = inlined_call_operand.vmem [shape: bf16[16,16], index: 0, kind: input, shape index: {}]   ;;  %s197_s2 = inlined_call_operand.vmem [shape: f32[1,128], index: 2, kind: input, shape index: {}]   ;;  %s198_s3 = inlined_call_operand.vmem [shape: f32[16,128], index: 3, kind: output, shape index: {}]  }
   0x1   :  { %140 = vmatprep.subr.bf16.mxu0 %v158_v0  ;;  %v148_v1 = vld [vmem:[%s195_s1] sm:$0xff]   ;;  %142 = vmatprep.mubr.msk.bf16.mxu0 %vm159_vm0, %v158_v0 }
   0x2   :  { %v149_v2 = vld [vmem:[%s196_s0] sm:$0xff]   ;;  %141 = vmatpush3.bf16.msra.mxu0 %v148_v1 }
   0x3   :  { %v137_v3 = vld [vmem:[%s197_s2] ss:$0 sm:$0xff] }
   0x5   :  { %143 = vmatmul.mubr.msk.bf16.vlgmr.msra.gmra.mxu0 %vm43_vm1, %v149_v2 }
  0xc5   :  { %v81_v4 = vpop.f32.mrf.mxu0 }
  0xc6   :  { %v104_v5 = vadd.f32 %v137_v3, %v81_v4 }
  0xc7   :  { %v144_v6 = vpop.f32.mrf.mxu0 }
  0xc8   :  { %106 = vmax.xlane.f32.xlu0 %v104_v5 }
  0xc9   :  { %v84_v7 = vpop.f32.mrf.mxu0 }
  0xca   :  { %v105_v8 = vadd.f32 %v137_v3, %v84_v7 }
  0xcb   :  { %v145_v9 = vpop.f32.mrf.mxu0 }
  0xcc   :  { %108 = vmax.xlane.f32.xlu0 %v105_v8 }
 0x151   :  { %v107_v10 = vpop.xlane.xlu0 %106 }
 0x152   :  { %v110_v11 = vsub.f32 %v104_v5, %v107_v10 }
 0x154   :  { %v112_v12 = vmul.f32 1.442695, %v110_v11 }
 0x155   :  { %v109_v13 = vpop.xlane.xlu0 %108 }
 0x156   :  { %v111_v14 = vsub.f32 %v105_v8, %v109_v13  ;;  %150 = vpow2.f32 %v112_v12 }
 0x158   :  { %v114_v15 = vmul.f32 1.442695, %v111_v14 }
 0x15a   :  { %152 = vpow2.f32 %v114_v15 }
 0x163   :  { %v151_v16 = vpop.eup %150 }
 0x164   :  { %116 = vadd.xlane.f32.xlu1 %v151_v16 }
 0x167   :  { %v153_v17 = vpop.eup %152 }
 0x168   :  { %118 = vadd.xlane.f32.xlu1 %v153_v17 }
 0x1ed   :  { %v117_v18 = vpop.xlane.xlu1 %116 }
 0x1ee   :  { %154 = vlog2.f32 %v117_v18 }
 0x1f1   :  { %v119_v19 = vpop.xlane.xlu1 %118 }
 0x1f2   :  { %156 = vlog2.f32 %v119_v19 }
 0x1fb   :  { %v155_v20 = vpop.eup %154 }
 0x1fc   :  { %v121_v21 = vmul.f32 0.6931472, %v155_v20 }
 0x1fe   :  { %v124_v22 = vsub.f32 %v110_v11, %v121_v21 }
 0x1ff   :  { %v157_v23 = vpop.eup %156 }
 0x200   :  { %126 = vst [vmem:[%s198_s3] sm:$0xff] %v124_v22  ;;  %v123_v24 = vmul.f32 0.6931472, %v157_v23 }
 0x202   :  { %v125_v25 = vsub.f32 %v111_v14, %v123_v24 }
 0x204   :  { %127 = vst [vmem:[%s198_s3 + $0x8] sm:$0xff] %v125_v25 }

// kernel: gin_net_forward.2
= control target key start
LH: loop header
LB: loop body
LE: loop exit
PB: predicated region body
PF: predicated region fallthrough
CT: control target
= control target key end

     0   :  { %v612_v0 = vmov 0.0   ;;  %vm613_vm0 = vmmov 0   ;;  %vm52_vm1 = vcmask 130048   ;;  %v124_v29 = vlaneseq  ;;  %s766_s1 = inlined_call_operand.vmem [shape: bf16[16,128], index: 1, kind: input, shape index: {}]   ;;  %s767_s0 = inlined_call_operand.vmem [shape: bf16[16,16], index: 0, kind: input, shape index: {}]   ;;  %s768_s2 = inlined_call_operand.vmem [shape: bf16[128,128], index: 2, kind: input, shape index: {}]   ;;  %s769_s4 = inlined_call_operand.vmem [shape: bf16[128,128], index: 4, kind: input, shape index: {}]   ;;  %s770_s5 = inlined_call_operand.vmem [shape: bf16[128,128], index: 5, kind: input, shape index: {}]   ;;  %s771_s3 = inlined_call_operand.vmem [shape: f32[2,128], index: 3, kind: input, shape index: {}]   ;;  %s772_s6 = inlined_call_operand.vmem [shape: bf16[16,128], index: 6, kind: output, shape index: {}]  }
   0x1   :  { %518 = vmatprep.subr.bf16.mxu0 %v612_v0  ;;  %v586_v1 = vld [vmem:[%s766_s1] sm:$0xff]   ;;  %520 = vmatprep.mubr.msk.bf16.mxu0 %vm613_vm0, %v612_v0  ;;  %v588_v3 = vld [vmem:[%s768_s2 + $0x38] sm:$0xff]   ;;  %v589_v4 = vld [vmem:[%s768_s2 + $0x30] sm:$0xff]  }
   0x2   :  { %v587_v2 = vld [vmem:[%s767_s0] sm:$0xff]   ;;  %524 = vmatprep.subr.bf16.mxu1 %v612_v0  ;;  %540 = vmatprep.mubr.msk.bf16.mxu1 %vm613_vm0, %v612_v0  ;;  %v590_v5 = vld [vmem:[%s768_s2 + $0x28] sm:$0xff]   ;;  %v592_v7 = vld [vmem:[%s768_s2 + $0x18] sm:$0xff]   ;;  %v125_v30 = vshrl.u32 %v124_v29, 7 }
   0x3   :  { %519 = vmatpush3.bf16.msra.mxu0 %v586_v1  ;;  %525 = vmatpush3.bf16.msra.mxu1 %v588_v3  ;;  %v591_v6 = vld [vmem:[%s768_s2 + $0x20] sm:$0xff]   ;;  %v593_v8 = vld [vmem:[%s768_s2 + $0x10] sm:$0xff]   ;;  %v594_v9 = vld [vmem:[%s768_s2 + $0x8] sm:$0xff]  }
   0x4   :  { %544 = vmatprep.subr.bf16.mxu0 %v612_v0  ;;  %526 = vmatprep.subr.bf16.mxu1 %v612_v0  ;;  %v595_v10 = vld [vmem:[%s768_s2] sm:$0xff]   ;;  %v596_v11 = vld [vmem:[%s769_s4 + $0x38] sm:$0xff]   ;;  %v597_v12 = vld [vmem:[%s769_s4 + $0x30] sm:$0xff]   ;;  %v126_v31 = vsub.s32 0, %v125_v30  ;;  %v238_v46 = vsub.s32 1, %v125_v30 }
   0x5   :  { %v598_v13 = vld [vmem:[%s769_s4 + $0x28] sm:$0xff]   ;;  %v599_v14 = vld [vmem:[%s769_s4 + $0x20] sm:$0xff]   ;;  %v600_v15 = vld [vmem:[%s769_s4 + $0x18] sm:$0xff]  }
   0x6   :  { %521 = vmatmul.mubr.msk.bf16.vlgmr.msra.gmra.mxu0 %vm52_vm1, %v587_v2  ;;  %v601_v21 = vld [vmem:[%s769_s4 + $0x10] sm:$0xff]   ;;  %v602_v22 = vld [vmem:[%s769_s4 + $0x8] sm:$0xff]   ;;  %v603_v23 = vld [vmem:[%s769_s4] sm:$0xff]  }
   0x7   :  { %560 = vmatprep.mubr.msk.bf16.mxu0 %vm613_vm0, %v612_v0  ;;  %527 = vmatpush3.bf16.msra.mxu1 %v589_v4  ;;  %v604_v24 = vld [vmem:[%s770_s5 + $0x38] sm:$0xff]   ;;  %v605_v25 = vld [vmem:[%s770_s5 + $0x30] sm:$0xff]   ;;  %v606_v26 = vld [vmem:[%s770_s5 + $0x28] sm:$0xff]  }
   0x8   :  { %528 = vmatprep.subr.bf16.mxu1 %v612_v0  ;;  %545 = vmatpush3.bf16.msra.mxu0 %v596_v11  ;;  %v607_v27 = vld [vmem:[%s770_s5 + $0x20] sm:$0xff]   ;;  %v608_v28 = vld [vmem:[%s770_s5 + $0x18] sm:$0xff]   ;;  %v609_v43 = vld [vmem:[%s770_s5 + $0x10] sm:$0xff]  }
   0x9   :  { %546 = vmatprep.subr.bf16.mxu0 %v612_v0  ;;  %v107_v32 = vld [vmem:[%s771_s3] sm:$0x3]  ;;  %v610_v44 = vld [vmem:[%s770_s5 + $0x8] sm:$0xff]  }
   0xa   :  { %v127_v33 = vrot.slane %v107_v32, %v126_v31  ;;  %v611_v45 = vld [vmem:[%s770_s5] sm:$0xff]   ;;  %v239_v47 = vrot.slane %v107_v32, %v238_v46 }
   0xb   :  { %529 = vmatpush3.bf16.msra.mxu1 %v590_v5 }
   0xc   :  { %530 = vmatprep.subr.bf16.mxu1 %v612_v0  ;;  %547 = vmatpush3.bf16.msra.mxu0 %v597_v12 }
   0xd   :  { %548 = vmatprep.subr.bf16.mxu0 %v612_v0 }
   0xf   :  { %531 = vmatpush3.bf16.msra.mxu1 %v591_v6 }
  0x10   :  { %532 = vmatprep.subr.bf16.mxu1 %v612_v0  ;;  %549 = vmatpush3.bf16.msra.mxu0 %v598_v13 }
  0x11   :  { %550 = vmatprep.subr.bf16.mxu0 %v612_v0 }
  0x13   :  { %533 = vmatpush3.bf16.msra.mxu1 %v592_v7 }
  0x14   :  { %534 = vmatprep.subr.bf16.mxu1 %v612_v0  ;;  %551 = vmatpush3.bf16.msra.mxu0 %v599_v14 }
  0x15   :  { %552 = vmatprep.subr.bf16.mxu0 %v612_v0 }
  0x17   :  { %535 = vmatpush3.bf16.msra.mxu1 %v593_v8 }
  0x18   :  { %536 = vmatprep.subr.bf16.mxu1 %v612_v0  ;;  %553 = vmatpush3.bf16.msra.mxu0 %v600_v15 }
  0x19   :  { %554 = vmatprep.subr.bf16.mxu0 %v612_v0 }
  0x1b   :  { %537 = vmatpush3.bf16.msra.mxu1 %v594_v9 }
  0x1c   :  { %538 = vmatprep.subr.bf16.mxu1 %v612_v0  ;;  %555 = vmatpush3.bf16.msra.mxu0 %v601_v21 }
  0x1d   :  { %556 = vmatprep.subr.bf16.mxu0 %v612_v0 }
  0x1f   :  { %539 = vmatpush3.bf16.msra.mxu1 %v595_v10 }
  0x20   :  { %564 = vmatprep.subr.bf16.mxu1 %v612_v0  ;;  %557 = vmatpush3.bf16.msra.mxu0 %v602_v22 }
  0x21   :  { %558 = vmatprep.subr.bf16.mxu0 %v612_v0 }
  0x24   :  { %559 = vmatpush3.bf16.msra.mxu0 %v603_v23 }
  0xc6   :  { %v90_v16 = vpop.f32.mrf.mxu0 }
  0xc8   :  { %v522_v17 = vpop.f32.mrf.mxu0 }
  0xca   :  { %v93_v18 = vpop.f32.mrf.mxu0 }
  0xcb   :  { %v106_v19 = vpack.c.bf16 %v93_v18, %v90_v16 }
  0xcc   :  { %v523_v20 = vpop.f32.mrf.mxu0 }
  0xcd   :  { %541 = vmatmul.mubr.bf16.vlgmr.msra.gmra.mxu1 %v106_v19 }
  0xce   :  { %580 = vmatprep.mubr.msk.bf16.mxu1 %vm613_vm0, %v612_v0  ;;  %565 = vmatpush3.bf16.msra.mxu1 %v604_v24 }
  0xcf   :  { %566 = vmatprep.subr.bf16.mxu1 %v612_v0 }
  0xd2   :  { %567 = vmatpush3.bf16.msra.mxu1 %v605_v25 }
  0xd3   :  { %568 = vmatprep.subr.bf16.mxu1 %v612_v0 }
  0xd6   :  { %569 = vmatpush3.bf16.msra.mxu1 %v606_v26 }
  0xd7   :  { %570 = vmatprep.subr.bf16.mxu1 %v612_v0 }
  0xda   :  { %571 = vmatpush3.bf16.msra.mxu1 %v607_v27 }
  0xdb   :  { %572 = vmatprep.subr.bf16.mxu1 %v612_v0 }
  0xde   :  { %573 = vmatpush3.bf16.msra.mxu1 %v608_v28 }
  0xdf   :  { %574 = vmatprep.subr.bf16.mxu1 %v612_v0 }
  0xe2   :  { %575 = vmatpush3.bf16.msra.mxu1 %v609_v43 }
  0xe3   :  { %576 = vmatprep.subr.bf16.mxu1 %v612_v0 }
  0xe6   :  { %577 = vmatpush3.bf16.msra.mxu1 %v610_v44 }
  0xe7   :  { %578 = vmatprep.subr.bf16.mxu1 %v612_v0 }
  0xea   :  { %579 = vmatpush3.bf16.msra.mxu1 %v611_v45 }
 0x18d   :  { %v210_v34 = vpop.f32.mrf.mxu1 }
 0x18e   :  { %v211_v36 = vadd.f32 %v210_v34, %v127_v33 }
 0x18f   :  { %v542_v35 = vpop.f32.mrf.mxu1 }
 0x190   :  { %v217_v40 = vmax.f32 %v211_v36, 0.0 }
 0x191   :  { %v213_v37 = vpop.f32.mrf.mxu1 }
 0x192   :  { %v214_v38 = vadd.f32 %v213_v37, %v127_v33 }
 0x193   :  { %v543_v39 = vpop.f32.mrf.mxu1 }
 0x194   :  { %v218_v41 = vmax.f32 %v214_v38, 0.0 }
 0x196   :  { %v219_v42 = vpack.c.bf16 %v218_v41, %v217_v40 }
 0x198   :  { %561 = vmatmul.mubr.bf16.vlgmr.msra.gmra.mxu0 %v219_v42 }
 0x258   :  { %v322_v48 = vpop.f32.mrf.mxu0 }
 0x259   :  { %v323_v50 = vadd.f32 %v322_v48, %v239_v47 }
 0x25a   :  { %v562_v49 = vpop.f32.mrf.mxu0 }
 0x25b   :  { %v329_v54 = vmax.f32 %v323_v50, 0.0 }
 0x25c   :  { %v325_v51 = vpop.f32.mrf.mxu0 }
 0x25d   :  { %v326_v52 = vadd.f32 %v325_v51, %v239_v47 }
 0x25e   :  { %v563_v53 = vpop.f32.mrf.mxu0 }
 0x25f   :  { %v330_v55 = vmax.f32 %v326_v52, 0.0 }
 0x261   :  { %v331_v56 = vpack.c.bf16 %v330_v55, %v329_v54 }
 0x263   :  { %581 = vmatmul.mubr.bf16.vlgmr.msra.gmra.mxu1 %v331_v56 }
 0x323   :  { %v430_v57 = vpop.f32.mrf.mxu1 }
 0x325   :  { %v582_v58 = vpop.f32.mrf.mxu1 }
 0x327   :  { %v433_v59 = vpop.f32.mrf.mxu1 }
 0x328   :  { %v487_v60 = vpack.c.bf16 %v433_v59, %v430_v57 }
 0x329   :  { %v583_v61 = vpop.f32.mrf.mxu1 }
 0x32a   :  { %488 = vst [vmem:[%s772_s6] sm:$0xff] %v487_v60  }

</bundles_post_ra>
